<compile_context>
chip_gen: v7x
topology: tpu7x:2x2x1
jax: 0.10.0
libtpu: 0.0.40
codegen_flags: <defaults>
</compile_context>

<pallas_src>
import jax
import jax.numpy as jnp
from jax.experimental import pallas as pl
from jax.experimental.pallas import tpu as pltpu


def _gram_mse_kernel(x1_ref, x2_ref, out_ref, acc_ref):
    """Accumulate (G1 - G2) over HW tiles; emit sum((G1 - G2)^2) per batch.

    x1_ref, x2_ref: (C, TK) f32 VMEM tiles (one batch element, one HW tile)
    out_ref:        (1, 1, 1) f32 per-batch partial sum
    acc_ref:        (C, C) f32 scratch holding the running G1 - G2
    """
    k = pl.program_id(1)

    @pl.when(k == 0)
    def _():
        acc_ref[...] = jnp.zeros_like(acc_ref)

    # Cast to bf16 in VMEM: MXU native bf16 path, f32 accumulation. The cast is
    # cheap VPU work and stays hidden under the input DMA (memory-bound regime).
    x1 = x1_ref[...].astype(jnp.bfloat16)
    x2 = x2_ref[...].astype(jnp.bfloat16)
    # gram tile = X @ X^T (contract over the spatial tile axis).
    dims = (((1,), (1,)), ((), ()))
    g1 = jax.lax.dot_general(x1, x1, dims, preferred_element_type=jnp.float32)
    g2 = jax.lax.dot_general(x2, x2, dims, preferred_element_type=jnp.float32)
    # Single accumulator read-modify-write per step.
    acc_ref[...] += g1 - g2

    @pl.when(k == pl.num_programs(1) - 1)
    def _():
        d = acc_ref[...]
        out_ref[...] = jnp.sum(d * d).reshape(1, 1, 1)


def _choose_tk(c, hw, bytes_per_elem, vmem_budget_bytes=8 * 1024 * 1024,
               max_tk=2048):
    """Largest HW tile (multiple of 128 dividing HW) that fits the VMEM budget."""
    # Budget covers: 2 inputs x 2 pipeline buffers x (C x TK x bytes).
    budget_tk = vmem_budget_bytes // (4 * c * bytes_per_elem)
    cap = min(budget_tk, max_tk, hw)
    if hw <= cap:
        return hw
    tk = (cap // 128) * 128
    while tk >= 128:
        if hw % tk == 0:
            return tk
        tk -= 128
    # TODO(synk): HW has no multiple-of-128 divisor under the budget; fall back
    # to the full spatial extent (may exceed the intended per-step VMEM budget).
    return hw


def _gram_sq_diff_sum(x1, x2):
    """Returns sum_{b,i,j} (G(x1)_bij - G(x2)_bij)^2 via Pallas.

    x1, x2: (B, C, HW) float32.
    """
    B, C, HW = x1.shape
    tk = _choose_tk(C, HW, jnp.dtype(x1.dtype).itemsize)
    n_k = HW // tk

    partials = pl.pallas_call(
        _gram_mse_kernel,
        out_shape=jax.ShapeDtypeStruct((B, 1, 1), jnp.float32),
        grid_spec=pltpu.PrefetchScalarGridSpec(
            num_scalar_prefetch=0,
            grid=(B, n_k),
            in_specs=[
                pl.BlockSpec((pl.Squeezed(), C, tk), lambda b, k: (b, 0, k)),
                pl.BlockSpec((pl.Squeezed(), C, tk), lambda b, k: (b, 0, k)),
            ],
            out_specs=pl.BlockSpec((1, 1, 1), lambda b, k: (b, 0, 0)),
            scratch_shapes=[pltpu.VMEM((C, C), jnp.float32)],
        ),
        compiler_params=pltpu.CompilerParams(
            dimension_semantics=("parallel", "arbitrary"),
            vmem_limit_bytes=32 * 1024 * 1024,
        ),
    )(x1, x2)
    # Final reduction over batch partials done in the JAX wrapper (keeps the
    # batch grid axis fully parallel for megacore on v7x).
    return jnp.sum(partials)


def contribution_of_layer(gen_feat_map, style_feat_map):
    """0.5 * F.mse_loss(G(gen), G(style), reduction='sum') / (C*H*W)^2"""
    b, c, h, w = gen_feat_map.shape
    x1 = gen_feat_map.reshape(b, c, h * w).astype(jnp.float32)
    x2 = style_feat_map.reshape(b, c, h * w).astype(jnp.float32)
    sq_sum = _gram_sq_diff_sum(x1, x2)
    return 0.5 * sq_sum / float((c * h * w) ** 2)


def style_loss(gen_feat_maps, style_feat_maps, weights):
    """Forward pass of StyleLoss given already-extracted feature maps."""
    # TODO(synk): the VGG FeatureMapExtractor forward (external `model`) is not
    # reproducible here; feature maps are supplied directly as inputs.
    x = jnp.float32(0.0)
    for w_l, gen_fm, sty_fm in zip(weights, gen_feat_maps, style_feat_maps):
        x = x + w_l * contribution_of_layer(gen_fm, sty_fm)
    return x


def _reference_style_loss(gen_feat_maps, style_feat_maps, weights):
    """Pure-JAX f32 reference matching the PyTorch semantics."""
    total = jnp.float32(0.0)
    for w_l, f1, f2 in zip(weights, gen_feat_maps, style_feat_maps):
        b, c, h, w = f1.shape
        x1 = f1.reshape(b, c, h * w)
        x2 = f2.reshape(b, c, h * w)
        g1 = jnp.einsum('bcs,bds->bcd', x1, x1)
        g2 = jnp.einsum('bcs,bds->bcd', x2, x2)
        contrib = 0.5 * jnp.sum((g1 - g2) ** 2) / float((c * h * w) ** 2)
        total = total + w_l * contrib
    return total


if __name__ == "__main__":
    key = jax.random.PRNGKey(0)

    # Three "layers" with small, forward-consistent NCHW feature-map shapes.
    # The last one (HW = 4096) exercises the multi-step HW tiling path.
    layer_shapes = [(2, 4, 16, 16), (2, 8, 8, 8), (2, 8, 64, 64)]
    weights = [0.4, 0.3, 0.3]

    gen_feat_maps, style_feat_maps = [], []
    for shp in layer_shapes:
        key, k1, k2 = jax.random.split(key, 3)
        gen_feat_maps.append(jax.random.normal(k1, shp, dtype=jnp.float32))
        style_feat_maps.append(jax.random.normal(k2, shp, dtype=jnp.float32))

    loss = jax.block_until_ready(
        style_loss(gen_feat_maps, style_feat_maps, weights))

    # Reference on bf16-quantized inputs (the kernel casts its VMEM tiles to
    # bf16 for the MXU, with f32 accumulation), computed in pure-JAX f32.
    gen_q = [g.astype(jnp.bfloat16).astype(jnp.float32) for g in gen_feat_maps]
    sty_q = [s.astype(jnp.bfloat16).astype(jnp.float32) for s in style_feat_maps]
    ref = jax.block_until_ready(_reference_style_loss(gen_q, sty_q, weights))

    assert jnp.allclose(loss, ref, rtol=5e-3, atol=1e-6), (loss, ref)
    print("KERNEL_OK")
</pallas_src>

<mosaic_0001>
module attributes {stable_mosaic.version = 11 : i64} {
  func.func @_gram_mse_kernel(%arg0: i32, %arg1: i32, %arg2: memref<1x4x256xf32, #tpu.memory_space<vmem>>, %arg3: memref<1x4x256xf32, #tpu.memory_space<vmem>>, %arg4: memref<1x1x1xf32, #tpu.memory_space<vmem>>, %arg5: memref<4x4xf32, #tpu.memory_space<vmem>>) attributes {dimension_semantics = [#tpu.dimension_semantics<parallel>, #tpu.dimension_semantics<arbitrary>], iteration_bounds = array<i64: 2, 1>, scalar_prefetch = 0 : i64, scratch_operands = 1 : i64, tpu.core_type = #tpu.core_type<tc>, window_params = [{transform_indices = @transform_0, window_bounds = array<i64: 1, 4, 256>}, {transform_indices = @transform_1, window_bounds = array<i64: 1, 4, 256>}, {transform_indices = @transform_2, window_bounds = array<i64: 1, 1, 1>}]} {
    %c0_i32 = arith.constant 0 : i32
    %0 = arith.cmpi eq, %arg1, %c0_i32 : i32
    %1 = arith.extui %0 : i1 to i32
    %c0_i32_0 = arith.constant 0 : i32
    %2 = arith.cmpi ne, %1, %c0_i32_0 : i32
    scf.if %2 {
      %cst_13 = arith.constant 0.000000e+00 : f32
      %18 = vector.broadcast %cst_13 : f32 to vector<4x4xf32>
      %c0_14 = arith.constant 0 : index
      %c0_15 = arith.constant 0 : index
      %19 = vector.load %arg5[%c0_14, %c0_15] : memref<4x4xf32, #tpu.memory_space<vmem>>, vector<4x4xf32>
      tpu.vector_store %arg5[%c0_14, %c0_15], %18 {strides = array<i32>} : memref<4x4xf32, #tpu.memory_space<vmem>>, vector<4x4xf32>,
    } else {
    }
    %c0 = arith.constant 0 : index
    %c0_1 = arith.constant 0 : index
    %c0_2 = arith.constant 0 : index
    %3 = vector.load %arg2[%c0, %c0_1, %c0_2] : memref<1x4x256xf32, #tpu.memory_space<vmem>>, vector<1x4x256xf32>
    %4 = vector.shape_cast %3 : vector<1x4x256xf32> to vector<4x256xf32>
    %5 = arith.truncf %4 : vector<4x256xf32> to vector<4x256xbf16>
    %c0_3 = arith.constant 0 : index
    %c0_4 = arith.constant 0 : index
    %c0_5 = arith.constant 0 : index
    %6 = vector.load %arg3[%c0_3, %c0_4, %c0_5] : memref<1x4x256xf32, #tpu.memory_space<vmem>>, vector<1x4x256xf32>
    %7 = vector.shape_cast %6 : vector<1x4x256xf32> to vector<4x256xf32>
    %8 = arith.truncf %7 : vector<4x256xf32> to vector<4x256xbf16>
    %cst = arith.constant dense<0.000000e+00> : vector<4x4xf32>
    %9 = tpu.matmul %5, %5, %cst {dimension_numbers = #tpu.dot_dimension_numbers<[1], [1], [0], [0], [0, 0, 1, 0], [], []>} : vector<4x256xbf16>, vector<4x256xbf16>, vector<4x4xf32> -> vector<4x4xf32>
    %cst_6 = arith.constant dense<0.000000e+00> : vector<4x4xf32>
    %10 = tpu.matmul %8, %8, %cst_6 {dimension_numbers = #tpu.dot_dimension_numbers<[1], [1], [0], [0], [0, 0, 1, 0], [], []>} : vector<4x256xbf16>, vector<4x256xbf16>, vector<4x4xf32> -> vector<4x4xf32>
    %c0_7 = arith.constant 0 : index
    %c0_8 = arith.constant 0 : index
    %11 = vector.load %arg5[%c0_7, %c0_8] : memref<4x4xf32, #tpu.memory_space<vmem>>, vector<4x4xf32>
    %12 = arith.subf %9, %10 : vector<4x4xf32>
    %13 = arith.addf %11, %12 : vector<4x4xf32>
    %c0_9 = arith.constant 0 : index
    %c0_10 = arith.constant 0 : index
    %14 = vector.load %arg5[%c0_9, %c0_10] : memref<4x4xf32, #tpu.memory_space<vmem>>, vector<4x4xf32>
    tpu.vector_store %arg5[%c0_9, %c0_10], %13 {strides = array<i32>} : memref<4x4xf32, #tpu.memory_space<vmem>>, vector<4x4xf32>,
    %c0_i32_11 = arith.constant 0 : i32
    %15 = arith.cmpi eq, %arg1, %c0_i32_11 : i32
    %16 = arith.extui %15 : i1 to i32
    %c0_i32_12 = arith.constant 0 : i32
    %17 = arith.cmpi ne, %16, %c0_i32_12 : i32
    scf.if %17 {
      %c0_13 = arith.constant 0 : index
      %c0_14 = arith.constant 0 : index
      %18 = vector.load %arg5[%c0_13, %c0_14] : memref<4x4xf32, #tpu.memory_space<vmem>>, vector<4x4xf32>
      %19 = arith.mulf %18, %18 : vector<4x4xf32>
      %20 = vector.shape_cast %19 : vector<4x4xf32> to vector<1x4x4xf32>
      %cst_15 = arith.constant dense<0.000000e+00> : vector<1xf32>
      %21 = vector.multi_reduction <add>, %20, %cst_15 [1, 2] : vector<1x4x4xf32> to vector<1xf32>
      %22 = vector.shape_cast %21 : vector<1xf32> to vector<1x1x1xf32>
      %23 = vector.extract %22[0, 0, 0] : f32 from vector<1x1x1xf32>
      %24 = vector.broadcast %23 : f32 to vector<1x1x1xf32>
      %c0_16 = arith.constant 0 : index
      %c0_17 = arith.constant 0 : index
      %c0_18 = arith.constant 0 : index
      %25 = vector.load %arg4[%c0_16, %c0_17, %c0_18] : memref<1x1x1xf32, #tpu.memory_space<vmem>>, vector<1x1x1xf32>
      tpu.vector_store %arg4[%c0_16, %c0_17, %c0_18], %24 {strides = array<i32>} : memref<1x1x1xf32, #tpu.memory_space<vmem>>, vector<1x1x1xf32>,
    } else {
    }
    return
  }
  func.func @transform_0(%arg0: i32, %arg1: i32) -> (i32, i32, i32) {
    %c0_i32 = arith.constant 0 : i32
    %c0_i32_0 = arith.constant 0 : i32
    return %arg0, %c0_i32, %arg1 : i32, i32, i32
  }
  func.func @transform_1(%arg0: i32, %arg1: i32) -> (i32, i32, i32) {
    %c0_i32 = arith.constant 0 : i32
    %c0_i32_0 = arith.constant 0 : i32
    return %arg0, %c0_i32, %arg1 : i32, i32, i32
  }
  func.func @transform_2(%arg0: i32, %arg1: i32) -> (i32, i32, i32) {
    %c0_i32 = arith.constant 0 : i32
    %c0_i32_0 = arith.constant 0 : i32
    %c0_i32_1 = arith.constant 0 : i32
    return %arg0, %c0_i32, %c0_i32_0 : i32, i32, i32
  }
}

</mosaic_0001>

<bundles_post_ra>
// kernel: tpu_custom_call.1
= control target key start
LH: loop header
LB: loop body
LE: loop exit
PB: predicated region body
PF: predicated region fallthrough
CT: control target
= control target key end

     0   :  { %7 = vsyncpa [#allocation4], 0  ;;  %s827_s0 = inlined_call_operand.hbm [shape: f32[2,4,256], index: 0, kind: input, shape index: {}]   ;;  %s828_s1 = inlined_call_operand.hbm [shape: f32[2,4,256], index: 1, kind: input, shape index: {}]   ;;  %s829_s2 = inlined_call_operand.vmem [shape: f32[2,1,1], index: 2, kind: output, shape index: {}]  }
   0x1   :  { %9 = vsyncpa [#allocation4 + $0x1], 0 }
   0x2   :  { %10 = vsyncpa [#allocation6], 0 }
   0x3   :  { %12 = vsyncpa [#allocation6 + $0x1], 0  ;;  %s652_s9 = smov 0   ;;  %s654_s10 = smov 0  }
   0x4   :  { %s656_s11 = smov 0   ;;  %s658_s12 = smov 0  }
   0x5   :  { %s660_s13 = smov 0   ;;  %s662_s14 = smov 0  }
   0x6 LB: > { %s436_s15 = sadd.s32 4294967295, %s632_s14   ;;  %s30_s16 = sadd.s32 1, %s628_s13  ;;  %s632_s14 = sphi %s662_s14, %s18_s14   ;;  %s628_s13 = sphi %s660_s13, %s843_s13   ;;  %s624_s12 = sphi %s658_s12, %s842_s12   ;;  %s620_s11 = sphi %s656_s11, %s841_s11   ;;  %s616_s10 = sphi %s654_s10, %s840_s10   ;;  %s612_s9 = sphi %s652_s9, %s839_s9  }
   0x7   : > { %p32_p0 = scmp.ge.s32.totalorder %s30_s16, 2  ;;  %s39_s17 = sadd.s32 1, %s620_s11 }
   0x8   : > { %p46_p1 = scmp.ne.s32.totalorder %s620_s11, %s616_s10  ;;  %p47_p2 = scmp.eq.s32.totalorder %s632_s14, 0 }
   0x9   : > { %s845_s16 = smov (%p32_p0, %s30_s16), 0  ;;  %p52_p4 = scmp.ne.s32.totalorder %s616_s10, %s612_s9 }
   0xa   : > { %p688_p3 = por %p47_p2, %p46_p1  ;;  %s34_s19 = ssub.s32 %s628_s13, %s845_s16 }
   0xb   : > { %p53_p5 = scmp.eq.s32.totalorder %s436_s15, 0  ;;  %p37_p6 = scmp.eq.s32.totalorder %s34_s19, 0 }
   0xc   : > { %p466_p8 = scmp.lt.s32.totalorder %s632_s14, 2  ;;  %s704_s22 = sand.u32 1, %s620_s11  }
   0xd   : > { %p695_p7 = por %p53_p5, %p52_p4  ;;  %s451_s23 = sshll.u32 %s628_s13, 7 }
   0xe   : > { %s701_s21 = scalar_select %p37_p6, %s620_s11, %s39_s17  }
   0xf   : > { %s832_s20 = scalar_select %p695_p7, 1, 0 }
  0x10   : > { %s440_s24 = sshll.u32 %s704_s22, 3  ;;  %s713_s27 = scalar_lea.hbm %s827_s0, %s451_s23 }
  0x11   : > { %s134_s28 = scalar_lea.vmem [#allocation3], %s440_s24  ;;  %p719_p9 = pnand %p466_p8, %p688_p3 }
  0x12   : > { %s144_s29 = sshll.u32 %s134_s28, 4  ;;  %s131_s3 = scalar_lea.sflag [#allocation4], %s704_s22  ;;  %s723_s29 = int_to_ptr.vmem [resolvable:$true] %s144_s29 }
  0x13   : > { %s518_s4 = scalar_lea.hbm %s713_s27, 128  ;;  %p520_p13 = pneg %p719_p9 }
  0x14   : > { %p519_p12 = scmp.ne.s32.totalorder %s713_s27, %s518_s4  ;;  %s523_s7 = scalar_lea.hbm %s827_s0, 256 }
  0x15   : > { %p524_p2 = scmp.lt.u32.totalorder %s713_s27, %s827_s0  ;;  %p525_p3 = scmp.lt.u32.totalorder %s523_s7, %s518_s4 }
  0x16   : > { %p521_p0 = pnand %p520_p13, %p519_p12  ;;  %p527_p5 = scmp.lt.u32.totalorder %s518_s4, %s713_s27 }
  0x17   : > { %p526_p4 = por %p525_p3, %p524_p2 }
  0x18   : > { %p522_p1 = pneg %p521_p0 }
  0x19   : > { %p528_p6 = por %p527_p5, %p526_p4 }
  0x1b   : > { %p529_p8 = pnand %p528_p6, %p522_p1 }
  0x1d   : > { %532 = shalt.err (!%p529_p8)
}
  0x1e   : > { %s533_s15 = scalar_lea.vmem %s723_s29, 128  ;;  %s634_s17 = smov [#allocation3]  }
  0x1f   : > { %p534_p12 = scmp.ne.s32.totalorder %s723_s29, %s533_s15  ;;  %s538_s18 = sshll.u32 %s634_s17, 4  ;;  %s539_s18 = int_to_ptr.vmem [resolvable:$false] %s538_s18 }
  0x20   : > { %s540_s19 = scalar_lea.vmem %s539_s18, 256  ;;  %p541_p11 = scmp.lt.s32.totalorder %s723_s29, %s539_s18 }
  0x21   : > { %p536_p0 = pnand %p534_p12, %p520_p13  ;;  %p542_p2 = scmp.lt.s32.totalorder %s540_s19, %s533_s15 }
  0x23   : > { %p537_p10 = pneg %p536_p0  ;;  %p543_p3 = por %p542_p2, %p541_p11 }
  0x25   : > { %p544_p4 = pnand %p543_p3, %p537_p10 }
  0x27   : > { %547 = shalt.err (!%p544_p4)
}
  0x28   : > { %462 = dma.hbm_to_vmem [thread:$0]  (!%p719_p9), %s713_s27, 128, %s723_s29, %s131_s3  }
  0x29   : > { %p834_p1 = scmp.lt.s32.totalorder %s632_s14, 3  ;;  %p835_p5 = scmp.ge.s32.totalorder %s632_s14, 1 }
  0x2a   : > { %s766_s4 = scalar_lea.hbm %s828_s1, %s451_s23  ;;  %s155_s5 = scalar_lea.vmem [#allocation5], %s440_s24 }
  0x2b   : > { %p757_p6 = pnand %p835_p5, %p834_p1  ;;  %s165_s6 = sshll.u32 %s155_s5, 4  ;;  %s166_s6 = int_to_ptr.vmem [resolvable:$true] %s165_s6 }
  0x2c   : > { %s152_s27 = scalar_lea.sflag [#allocation6], %s704_s22  ;;  %s548_s29 = scalar_lea.hbm %s766_s4, 128 }
  0x2d   : > { %s836_s25 = scalar_select %p757_p6, 1, 0 }
  0x2e   : > { %p549_p10 = scmp.ne.s32.totalorder %s766_s4, %s548_s29  ;;  %s553_s23 = scalar_lea.hbm %s828_s1, 256 }
  0x2f   : > { %p554_p12 = scmp.lt.u32.totalorder %s766_s4, %s828_s1  ;;  %p555_p0 = scmp.lt.u32.totalorder %s553_s23, %s548_s29 }
  0x30   : > { %p551_p11 = pnand %p549_p10, %p520_p13  ;;  %p557_p3 = scmp.lt.u32.totalorder %s548_s29, %s766_s4 }
  0x31   : > { %p556_p2 = por %p555_p0, %p554_p12 }
  0x32   : > { %p552_p8 = pneg %p551_p11 }
  0x33   : > { %p558_p4 = por %p557_p3, %p556_p2 }
  0x35   : > { %p559_p1 = pnand %p558_p4, %p552_p8 }
  0x37   : > { %562 = shalt.err (!%p559_p1)
}
  0x38   : > { %s563_s22 = scalar_lea.vmem %s166_s6, 128  ;;  %s635_s24 = smov [#allocation5]  }
  0x39   : > { %p564_p5 = scmp.ne.s32.totalorder %s166_s6, %s563_s22  ;;  %s568_s15 = sshll.u32 %s635_s24, 4  ;;  %s569_s15 = int_to_ptr.vmem [resolvable:$false] %s568_s15 }
  0x3a   : > { %s570_s17 = scalar_lea.vmem %s569_s15, 256  ;;  %p571_p7 = scmp.lt.s32.totalorder %s166_s6, %s569_s15 }
  0x3b   : > { %p566_p10 = pnand %p564_p5, %p520_p13  ;;  %p572_p6 = scmp.lt.s32.totalorder %s570_s17, %s563_s22 }
  0x3d   : > { %p567_p11 = pneg %p566_p10  ;;  %p573_p0 = por %p572_p6, %p571_p7 }
  0x3f   : > { %p574_p12 = pnand %p573_p0, %p567_p11 }
  0x41   : > { %577 = shalt.err (!%p574_p12)
}
  0x42   : > { %465 = dma.hbm_to_vmem [thread:$0]  (!%p719_p9), %s766_s4, 128, %s166_s6, %s152_s27  }
  0x43   : > { %p837_p8 = scmp.ne.s32.totalorder %s836_s25, 0 }
  0x44   : > { %s176_s18 = sand.u32 (!%p837_p8), 1, %s616_s10   ;;  %p838_p13 = scmp.ne.s32.totalorder (!%p837_p8), %s832_s20, 0 }
  0x45   : > { %174 = sbr.rel (%p837_p8) target bundleno = 525 (0x20d), region = 28  ;;  %s447_s19 = sshll.u32 (!%p837_p8), %s176_s18, 3 }
  0x46   : > { %s177_s26 = scalar_lea.sflag (!%p837_p8), [#allocation4], %s176_s18  ;;  %s180_s28 = scalar_lea.vmem (!%p837_p8), [#allocation3], %s447_s19 }
  0x4c   : > { %603 = dma.done.wait (%p838_p13), %s177_s26, 128  }
  0x4d   : > { %605 = vsyncadd (%p838_p13), %s177_s26, 4294967168  ;;  %s186_s5 = scalar_lea.sflag [#allocation6], %s176_s18  ;;  %s189_s29 = scalar_lea.vmem [#allocation5], %s447_s19 }
  0x4e   : > { %607 = dma.done.wait (%p838_p13), %s186_s5, 128  }
  0x4f   : > { %609 = vsyncadd (%p838_p13), %s186_s5, 4294967168  ;;  %v225_v0 = vld [vmem:[%s180_s28] sm:$0xff]  ;;  %v231_v1 = vld [vmem:[%s189_s29] sm:$0xff]  ;;  %vm223_vm0 = vcmask 27648   ;;  %v636_v8 = vmov 0.0   ;;  %p215_p7 = scmp.lt.s32.totalorder %s624_s12, 1 }
  0x50   : > { %v227_v2 = vcombine.high %v225_v0, %v225_v0  ;;  %v233_v3 = vcombine.high %v231_v1, %v231_v1  ;;  %v229_v4 = vpack.c.bf16 %v225_v0, %v225_v0  ;;  %v235_v5 = vpack.c.bf16 %v231_v1, %v231_v1  ;;  %224 = vst.msk [vmem:[#allocation2] sm:$0xf] %vm223_vm0, %v636_v8 }
  0x51   : > { %s847_s12 = smov (!%p215_p7, %s624_s12), 1  ;;  %vm338_vm1 = vcmask 0  }
  0x52   : > { %v230_v6 = vpack.c.bf16 %v227_v2, %v227_v2  ;;  %v236_v7 = vpack.c.bf16 %v233_v3, %v233_v3  ;;  %s217_s25 = scalar_lea.vmem %s829_s2, %s847_s12 }
  0x54   : > { %237 = vmatprep.subr.bf16.mxu0 %v230_v6  ;;  %277 = vmatprep.subr.bf16.mxu1 %v236_v7 }
  0x55   : > { %238 = vmatpush1.bf16.xpose.msra.mxu0 %v229_v4  ;;  %278 = vmatpush1.bf16.xpose.msra.mxu1 %v235_v5 }
  0x56   : > { %269 = vmatprep.mubr.bf16.mxu0 %v230_v6  ;;  %309 = vmatprep.mubr.bf16.mxu1 %v236_v7 }
  0x57   : > { %v317_v11 = vld [vmem:[#allocation2] sm:$0xf] }
  0x5c   : > { %270 = vmatmul.mubr.bf16.vlgmr.msra.gmra.mrb[0].mxu0 %v229_v4  ;;  %310 = vmatmul.mubr.bf16.vlgmr.msra.gmra.mrb[0].mxu1 %v235_v5 }
 0x12f   : > { %v271_v9 = vpop.f32.mrb[0].mxu0  ;;  %v311_v10 = vpop.f32.mrb[0].mxu1 }
 0x130   : > { %v318_v12 = vsub.f32 %v271_v9, %v311_v10  ;;  %v273_v13 = vpop.f32.mrb[1].mxu0  ;;  %v313_v14 = vpop.f32.mrb[1].mxu1 }
 0x131   : > { %v274_v15 = vpop.f32.mrb[2].mxu0  ;;  %v314_v16 = vpop.f32.mrb[2].mxu1 }
 0x132   : > { %v275_v17 = vpop.f32.mrb[3].mxu0  ;;  %v315_v18 = vpop.f32.mrb[3].mxu1  ;;  %v319_v19 = vadd.f32 %v318_v12, %v317_v11 }
 0x134   : > { %321 = vst.msk [vmem:[#allocation2] sm:$0xf] %vm223_vm0, %v319_v19 }
 0x13b   : > { %v325_v20 = vld [vmem:[#allocation2] sm:$0xf] }
 0x13c   : > { %v326_v21 = vmul.f32 %v325_v20, %v325_v20 }
 0x13e   : > { %v327_v22 = vsel %vm223_vm0, %v326_v21, 0.0 }
 0x13f   : > { %328 = vadd.xlane.f32.xlu0 %v327_v22 }
 0x1cc   : > { %v329_v23 = vpop.xlane.xlu0 %328 }
 0x1cd   : > { %v330_v24 = vrot.slane %v329_v23, 4 }
 0x1cf   : > { %v331_v25 = vadd.f32 %v330_v24, %v329_v23 }
 0x1d1   : > { %v332_v26 = vrot.slane %v331_v25, 2 }
 0x1d3   : > { %v333_v27 = vadd.f32 %v332_v26, %v331_v25 }
 0x1d5   : > { %v334_v28 = vrot.slane %v333_v27, 1 }
 0x1d7   : > { %v335_v29 = vadd.f32 %v334_v28, %v333_v27 }
 0x1d9   : > { %453 = vpush %v335_v29 }
 0x20a   : > { %s454_s4 = spop %453 }
 0x20b   : > { %v337_v30 = vstv %s454_s4 }
 0x20c   : > { %339 = vst.msk [vmem:[%s217_s25] sm:$0x1] %vm338_vm1, %v337_v30 }
 0x20d PF: > { %s18_s14 = sadd.s32 1, %s632_s14   ;;  %s839_s9 = smov %s616_s10 }
 0x20e   : > { %p15_p9 = scmp.ge.s32.totalorder %s18_s14, 4   ;;  %s840_s10 = smov %s620_s11 }
 0x20f   : > { %s841_s11 = smov %s701_s21  ;;  %s842_s12 = smov %s628_s13 }
 0x210   : > { %s843_s13 = smov %s845_s16  ;;  %17 = sbr.rel (!%p15_p9) target bundleno = 6 (0x6), region = 89 }
 0x217   :  { %357 = vsyncpa [#allocation4], 1 }
 0x218   :  { %359 = vsyncpa [#allocation4 + $0x1], 1 }
 0x219   :  { %360 = vsyncpa [#allocation6], 1 }
 0x21a   :  { %362 = vsyncpa [#allocation6 + $0x1], 1 }

</bundles_post_ra>
